<compile_context>
chip_gen: v6e
topology: v6e:2x2x1
jax: 0.10.0
libtpu: 0.0.40
codegen_flags: <defaults>
</compile_context>

<pallas_src>
import functools
import itertools

import jax
import jax.numpy as jnp
from jax.experimental import pallas as pl
from jax.experimental.pallas import tpu as pltpu


def _force_field_kernel(cart_ref, dst_ref, rawx_ref, invb_ref, out_ref, *,
                        radial_cutoff, strength, spatial_dim, batch_block):
    """Repulsive pseudo-force in relative coordinates, added onto raw.X.

    Per batch element layout:
      cart_ref[t] : [N, D]     source atom i in sublanes
      dst_ref[t]  : [D, S*N]   (shift image s, dst atom j) packed along lanes
    """
    D = spatial_dim
    rc2 = radial_cutoff * radial_cutoff
    two_s = 2.0 * strength
    two_s_rc = 2.0 * strength * radial_cutoff

    def body(t, carry):
        cart = cart_ref[t]       # [N, D]
        dst = dst_ref[t]         # [D, S*N]
        raw_x = rawx_ref[t]      # [N, D]
        inv_b = invb_ref[t]      # [D, D]

        # diffs[d][i, s*N + j] = (pos_j[d] + shift_s[d]) - pos_i[d]   -> [N, S*N]
        diffs = [dst[d:d + 1, :] - cart[:, d:d + 1] for d in range(D)]
        r2 = diffs[0] * diffs[0]
        for d in range(1, D):
            r2 = r2 + diffs[d] * diffs[d]

        # Exclude self-pairs (r ~ 0) and pairs beyond the cutoff.
        valid = jnp.logical_and(r2 > 1e-12, r2 < rc2)
        # 2 s (r - r0)/r == 2 s - 2 s r0 * rsqrt(r2): one EUP push, no sqrt+div.
        pref = jnp.where(
            valid,
            two_s - two_s_rc * jax.lax.rsqrt(jnp.maximum(r2, 1e-12)),
            0.0)

        # Scatter-add onto the source atom i == reduce over (shift, dst) lanes.
        force_col = [jnp.sum(pref * diffs[d], axis=1, keepdims=True)
                     for d in range(D)]                        # D x [N, 1]

        # Cartesian -> relative, emitted directly in the [N, D] output layout:
        #   rel_force[i, k] = sum_d force[i, d] * inv_basis[d, k]
        rel_force = force_col[0] * inv_b[0:1, :]
        for d in range(1, D):
            rel_force = rel_force + force_col[d] * inv_b[d:d + 1, :]

        out_ref[t] = (raw_x + rel_force).astype(out_ref.dtype)
        return carry

    # fori_loop (not a static Python for) bounds per-element vreg live ranges.
    jax.lax.fori_loop(0, batch_block, body, 0, unroll=False)


def _pick_batch_block(batch_size):
    """Pack several batch elements per grid step.

    Prefer keeping >= 2 grid steps (v7x has two TensorCores); otherwise pack
    the whole batch into one step (v5e/v6e: single TC, fewer steps is better).
    """
    for tb in (8, 4, 2):
        if batch_size % tb == 0 and batch_size // tb >= 2:
            return tb
    if batch_size >= 2 and batch_size % 2 == 0:
        return 1
    return batch_size


def force_field_augmented_scores(rel_coords, basis_vectors, raw_scores_axl,
                                 radial_cutoff, strength, batch_block=None):
    """JAX wrapper reproducing ForceFieldAugmentedScoreNetwork.forward."""
    raw_a, raw_x, raw_l = raw_scores_axl
    b_size, n_atoms, dim = rel_coords.shape

    if batch_block is None:
        batch_block = _pick_batch_block(b_size)
    assert b_size % batch_block == 0
    grid_b = b_size // batch_block

    rel = rel_coords.astype(jnp.float32)
    basis = basis_vectors.astype(jnp.float32)
    raw_x32 = raw_x.astype(jnp.float32)

    # Tiny wrapper-side precomputation (O(B*N*D) and O(B*S*D) tensors only).
    cart = jnp.einsum('bnd,bde->bne', rel, basis)                     # [B, N, D]
    n_vecs = jnp.asarray(
        list(itertools.product((-1.0, 0.0, 1.0), repeat=dim)), jnp.float32)
    s_count = n_vecs.shape[0]                                         # 3**D
    shifts = jnp.einsum('sd,bde->bse', n_vecs, basis)                 # [B, S, D]
    # dst_packed[b, d, s*N + j] = cart[b, j, d] + shifts[b, s, d]
    dst_packed = (jnp.transpose(shifts, (0, 2, 1))[:, :, :, None]     # [B, D, S, 1]
                  + jnp.transpose(cart, (0, 2, 1))[:, :, None, :])    # [B, D, 1, N]
    dst_packed = dst_packed.reshape(b_size, dim, s_count * n_atoms)   # [B, D, S*N]
    inv_basis = jnp.linalg.inv(basis)                                 # [B, D, D]

    # TODO(synk): get_periodic_adjacency_information may enumerate more image
    # shells when radial_cutoff exceeds the minimum box length; this kernel uses
    # the 3**D nearest-image shells (exact for radial_cutoff < min box length).
    kernel = functools.partial(_force_field_kernel,
                               radial_cutoff=float(radial_cutoff),
                               strength=float(strength),
                               spatial_dim=dim,
                               batch_block=batch_block)

    out = pl.pallas_call(
        kernel,
        out_shape=jax.ShapeDtypeStruct((b_size, n_atoms, dim), jnp.float32),
        grid_spec=pltpu.PrefetchScalarGridSpec(
            num_scalar_prefetch=0,
            grid=(grid_b,),
            in_specs=[
                pl.BlockSpec((batch_block, n_atoms, dim), lambda i: (i, 0, 0)),
                pl.BlockSpec((batch_block, dim, s_count * n_atoms),
                             lambda i: (i, 0, 0)),
                pl.BlockSpec((batch_block, n_atoms, dim), lambda i: (i, 0, 0)),
                pl.BlockSpec((batch_block, dim, dim), lambda i: (i, 0, 0)),
            ],
            out_specs=pl.BlockSpec((batch_block, n_atoms, dim),
                                   lambda i: (i, 0, 0)),
        ),
        compiler_params=pltpu.CompilerParams(
            dimension_semantics=("parallel",)),
    )(cart, dst_packed, raw_x32, inv_basis)

    updated_x = out.astype(raw_x.dtype)
    # AXL(A=raw.A, X=raw.X + forces, L=raw.L)
    return raw_a, updated_x, raw_l


def _reference_updated_x(rel_coords, basis_vectors, raw_x, radial_cutoff, strength):
    """Pure-JAX reference of raw.X + relative pseudo-force (dense formulation)."""
    _, _, dim = rel_coords.shape
    cart = jnp.einsum('bnd,bde->bne', rel_coords, basis_vectors)
    n_vecs = jnp.asarray(list(itertools.product((-1.0, 0.0, 1.0), repeat=dim)),
                         dtype=jnp.float32)
    shifts = jnp.einsum('sd,bde->bse', n_vecs, basis_vectors)
    # diff[b, s, i, j, :] = pos_j - pos_i + shift_s   (i = src, j = dst)
    diff = (cart[:, None, None, :, :] - cart[:, None, :, None, :]
            + shifts[:, :, None, None, :])
    r = jnp.linalg.norm(diff, axis=-1)
    valid = (r > 1e-6) & (r < radial_cutoff)
    pref = jnp.where(valid, 2.0 * strength * (r - radial_cutoff) / (r + 1e-8), 0.0)
    force = jnp.sum(pref[..., None] * diff, axis=(1, 3))        # scatter to src
    rel_force = jnp.einsum('bnd,bde->bne', force, jnp.linalg.inv(basis_vectors))
    return raw_x + rel_force


if __name__ == "__main__":
    key = jax.random.PRNGKey(0)
    batch_size, n_atoms, spatial_dim = 2, 16, 3
    num_atom_types = 4
    radial_cutoff, strength = 1.5, 2.0   # ForceFieldParameters

    k1, k2, k3, k4, k5 = jax.random.split(key, 5)
    # batch[NOISY_AXL_COMPOSITION].X : relative coordinates in [0, 1)
    rel_coords = jax.random.uniform(k1, (batch_size, n_atoms, spatial_dim),
                                    dtype=jnp.float32)
    # lattice parameters -> unit-cell vectors (orthorhombic, min_box_size=1.0)
    # TODO(synk): full map_noisy_axl_lattice_parameters_to_unit_cell_vectors
    # (with cell angles) kept as diagonal boxes here.
    box_lengths = jnp.maximum(
        4.0 + jax.random.uniform(k2, (batch_size, spatial_dim), dtype=jnp.float32),
        1.0)
    basis_vectors = jax.vmap(jnp.diag)(box_lengths)              # [B, D, D]

    # TODO(synk): the wrapped ScoreNetwork is arbitrary; its raw AXL scores are
    # provided as deterministic synthetic inputs instead of a learned network.
    raw_a = jax.random.normal(k3, (batch_size, n_atoms, num_atom_types),
                              dtype=jnp.float32)
    raw_x = jax.random.normal(k4, (batch_size, n_atoms, spatial_dim),
                              dtype=jnp.float32)
    raw_l = jax.random.normal(k5, (batch_size, 6), dtype=jnp.float32)

    a_out, x_out, l_out = force_field_augmented_scores(
        rel_coords, basis_vectors, (raw_a, raw_x, raw_l),
        radial_cutoff, strength)
    jax.block_until_ready(x_out)

    ref_x = _reference_updated_x(rel_coords, basis_vectors, raw_x,
                                 radial_cutoff, strength)
    assert x_out.shape == raw_x.shape
    assert jnp.allclose(x_out, ref_x, atol=1e-3, rtol=1e-3), \
        "Pallas kernel does not match pure-JAX reference"
    assert jnp.array_equal(a_out, raw_a) and jnp.array_equal(l_out, raw_l)

    print("KERNEL_OK")
</pallas_src>

<mosaic_0001>
module attributes {stable_mosaic.version = 11 : i64} {
  func.func @_force_field_kernel(%arg0: i32, %arg1: memref<1x16x3xf32, #tpu.memory_space<vmem>>, %arg2: memref<1x3x432xf32, #tpu.memory_space<vmem>>, %arg3: memref<1x16x3xf32, #tpu.memory_space<vmem>>, %arg4: memref<1x3x3xf32, #tpu.memory_space<vmem>>, %arg5: memref<1x16x3xf32, #tpu.memory_space<vmem>>) attributes {dimension_semantics = [#tpu.dimension_semantics<parallel>], iteration_bounds = array<i64: 2>, scalar_prefetch = 0 : i64, scratch_operands = 0 : i64, tpu.core_type = #tpu.core_type<tc>, window_params = [{transform_indices = @transform_0, window_bounds = array<i64: 1, 16, 3>}, {transform_indices = @transform_1, window_bounds = array<i64: 1, 3, 432>}, {transform_indices = @transform_2, window_bounds = array<i64: 1, 16, 3>}, {transform_indices = @transform_3, window_bounds = array<i64: 1, 3, 3>}, {transform_indices = @transform_4, window_bounds = array<i64: 1, 16, 3>}]} {
    %c0_i32 = arith.constant 0 : i32
    %0 = arith.index_cast %c0_i32 : i32 to index
    %c0 = arith.constant 0 : index
    %c0_0 = arith.constant 0 : index
    %1 = vector.load %arg1[%0, %c0, %c0_0] : memref<1x16x3xf32, #tpu.memory_space<vmem>>, vector<1x16x3xf32>
    %2 = vector.shape_cast %1 : vector<1x16x3xf32> to vector<16x3xf32>
    %3 = arith.index_cast %c0_i32 : i32 to index
    %c0_1 = arith.constant 0 : index
    %c0_2 = arith.constant 0 : index
    %4 = vector.load %arg2[%3, %c0_1, %c0_2] : memref<1x3x432xf32, #tpu.memory_space<vmem>>, vector<1x3x432xf32>
    %5 = vector.shape_cast %4 : vector<1x3x432xf32> to vector<3x432xf32>
    %6 = arith.index_cast %c0_i32 : i32 to index
    %c0_3 = arith.constant 0 : index
    %c0_4 = arith.constant 0 : index
    %7 = vector.load %arg3[%6, %c0_3, %c0_4] : memref<1x16x3xf32, #tpu.memory_space<vmem>>, vector<1x16x3xf32>
    %8 = vector.shape_cast %7 : vector<1x16x3xf32> to vector<16x3xf32>
    %9 = arith.index_cast %c0_i32 : i32 to index
    %c0_5 = arith.constant 0 : index
    %c0_6 = arith.constant 0 : index
    %10 = vector.load %arg4[%9, %c0_5, %c0_6] : memref<1x3x3xf32, #tpu.memory_space<vmem>>, vector<1x3x3xf32>
    %11 = vector.shape_cast %10 : vector<1x3x3xf32> to vector<3x3xf32>
    %12 = vector.extract_strided_slice %5 {offsets = [0, 0], sizes = [1, 432], strides = [1, 1]} : vector<3x432xf32> to vector<1x432xf32>
    %13 = vector.extract_strided_slice %2 {offsets = [0, 0], sizes = [16, 1], strides = [1, 1]} : vector<16x3xf32> to vector<16x1xf32>
    %14 = vector.broadcast %12 : vector<1x432xf32> to vector<16x432xf32>
    %15 = vector.broadcast %13 : vector<16x1xf32> to vector<16x432xf32>
    %16 = arith.subf %14, %15 : vector<16x432xf32>
    %17 = vector.extract_strided_slice %5 {offsets = [1, 0], sizes = [1, 432], strides = [1, 1]} : vector<3x432xf32> to vector<1x432xf32>
    %18 = vector.extract_strided_slice %2 {offsets = [0, 1], sizes = [16, 1], strides = [1, 1]} : vector<16x3xf32> to vector<16x1xf32>
    %19 = vector.broadcast %17 : vector<1x432xf32> to vector<16x432xf32>
    %20 = vector.broadcast %18 : vector<16x1xf32> to vector<16x432xf32>
    %21 = arith.subf %19, %20 : vector<16x432xf32>
    %22 = vector.extract_strided_slice %5 {offsets = [2, 0], sizes = [1, 432], strides = [1, 1]} : vector<3x432xf32> to vector<1x432xf32>
    %23 = vector.extract_strided_slice %2 {offsets = [0, 2], sizes = [16, 1], strides = [1, 1]} : vector<16x3xf32> to vector<16x1xf32>
    %24 = vector.broadcast %22 : vector<1x432xf32> to vector<16x432xf32>
    %25 = vector.broadcast %23 : vector<16x1xf32> to vector<16x432xf32>
    %26 = arith.subf %24, %25 : vector<16x432xf32>
    %27 = arith.mulf %16, %16 : vector<16x432xf32>
    %28 = arith.mulf %21, %21 : vector<16x432xf32>
    %29 = arith.addf %27, %28 : vector<16x432xf32>
    %30 = arith.mulf %26, %26 : vector<16x432xf32>
    %31 = arith.addf %29, %30 : vector<16x432xf32>
    %cst = arith.constant 9.99999996E-13 : f32
    %32 = vector.broadcast %cst : f32 to vector<16x432xf32>
    %33 = arith.cmpf ogt, %31, %32 : vector<16x432xf32>
    %cst_7 = arith.constant 2.250000e+00 : f32
    %34 = vector.broadcast %cst_7 : f32 to vector<16x432xf32>
    %35 = arith.cmpf olt, %31, %34 : vector<16x432xf32>
    %36 = arith.andi %33, %35 : vector<16x432xi1>
    %cst_8 = arith.constant 9.99999996E-13 : f32
    %37 = vector.broadcast %cst_8 : f32 to vector<16x432xf32>
    %38 = arith.maximumf %31, %37 : vector<16x432xf32>
    %39 = math.rsqrt %38 : vector<16x432xf32>
    %cst_9 = arith.constant 6.000000e+00 : f32
    %40 = vector.broadcast %cst_9 : f32 to vector<16x432xf32>
    %41 = arith.mulf %40, %39 : vector<16x432xf32>
    %cst_10 = arith.constant 4.000000e+00 : f32
    %42 = vector.broadcast %cst_10 : f32 to vector<16x432xf32>
    %43 = arith.subf %42, %41 : vector<16x432xf32>
    %cst_11 = arith.constant 0.000000e+00 : f32
    %44 = vector.broadcast %cst_11 : f32 to vector<16x432xf32>
    %45 = arith.select %36, %43, %44 : vector<16x432xi1>, vector<16x432xf32>
    %46 = arith.mulf %45, %16 : vector<16x432xf32>
    %cst_12 = arith.constant dense<0.000000e+00> : vector<16xf32>
    %47 = vector.multi_reduction <add>, %46, %cst_12 [1] : vector<16x432xf32> to vector<16xf32>
    %48 = vector.shape_cast %47 : vector<16xf32> to vector<16x1xf32>
    %49 = arith.mulf %45, %21 : vector<16x432xf32>
    %cst_13 = arith.constant dense<0.000000e+00> : vector<16xf32>
    %50 = vector.multi_reduction <add>, %49, %cst_13 [1] : vector<16x432xf32> to vector<16xf32>
    %51 = vector.shape_cast %50 : vector<16xf32> to vector<16x1xf32>
    %52 = arith.mulf %45, %26 : vector<16x432xf32>
    %cst_14 = arith.constant dense<0.000000e+00> : vector<16xf32>
    %53 = vector.multi_reduction <add>, %52, %cst_14 [1] : vector<16x432xf32> to vector<16xf32>
    %54 = vector.shape_cast %53 : vector<16xf32> to vector<16x1xf32>
    %55 = vector.extract_strided_slice %11 {offsets = [0, 0], sizes = [1, 3], strides = [1, 1]} : vector<3x3xf32> to vector<1x3xf32>
    %56 = vector.broadcast %48 : vector<16x1xf32> to vector<16x3xf32>
    %57 = vector.broadcast %55 : vector<1x3xf32> to vector<16x3xf32>
    %58 = arith.mulf %56, %57 : vector<16x3xf32>
    %59 = vector.extract_strided_slice %11 {offsets = [1, 0], sizes = [1, 3], strides = [1, 1]} : vector<3x3xf32> to vector<1x3xf32>
    %60 = vector.broadcast %51 : vector<16x1xf32> to vector<16x3xf32>
    %61 = vector.broadcast %59 : vector<1x3xf32> to vector<16x3xf32>
    %62 = arith.mulf %60, %61 : vector<16x3xf32>
    %63 = arith.addf %58, %62 : vector<16x3xf32>
    %64 = vector.extract_strided_slice %11 {offsets = [2, 0], sizes = [1, 3], strides = [1, 1]} : vector<3x3xf32> to vector<1x3xf32>
    %65 = vector.broadcast %54 : vector<16x1xf32> to vector<16x3xf32>
    %66 = vector.broadcast %64 : vector<1x3xf32> to vector<16x3xf32>
    %67 = arith.mulf %65, %66 : vector<16x3xf32>
    %68 = arith.addf %63, %67 : vector<16x3xf32>
    %69 = arith.addf %8, %68 : vector<16x3xf32>
    %70 = arith.index_cast %c0_i32 : i32 to index
    %c0_15 = arith.constant 0 : index
    %c0_16 = arith.constant 0 : index
    %71 = vector.load %arg5[%70, %c0_15, %c0_16] : memref<1x16x3xf32, #tpu.memory_space<vmem>>, vector<1x16x3xf32>
    %72 = vector.shape_cast %71 : vector<1x16x3xf32> to vector<16x3xf32>
    %73 = vector.shape_cast %69 : vector<16x3xf32> to vector<1x16x3xf32>
    tpu.vector_store %arg5[%70, %c0_15, %c0_16], %73 {strides = array<i32>} : memref<1x16x3xf32, #tpu.memory_space<vmem>>, vector<1x16x3xf32>,
    %c1_i32 = arith.constant 1 : i32
    return
  }
  func.func @transform_0(%arg0: i32) -> (i32, i32, i32) {
    %c0_i32 = arith.constant 0 : i32
    %c0_i32_0 = arith.constant 0 : i32
    %c0_i32_1 = arith.constant 0 : i32
    return %arg0, %c0_i32, %c0_i32_0 : i32, i32, i32
  }
  func.func @transform_1(%arg0: i32) -> (i32, i32, i32) {
    %c0_i32 = arith.constant 0 : i32
    %c0_i32_0 = arith.constant 0 : i32
    %c0_i32_1 = arith.constant 0 : i32
    return %arg0, %c0_i32, %c0_i32_0 : i32, i32, i32
  }
  func.func @transform_2(%arg0: i32) -> (i32, i32, i32) {
    %c0_i32 = arith.constant 0 : i32
    %c0_i32_0 = arith.constant 0 : i32
    %c0_i32_1 = arith.constant 0 : i32
    return %arg0, %c0_i32, %c0_i32_0 : i32, i32, i32
  }
  func.func @transform_3(%arg0: i32) -> (i32, i32, i32) {
    %c0_i32 = arith.constant 0 : i32
    %c0_i32_0 = arith.constant 0 : i32
    %c0_i32_1 = arith.constant 0 : i32
    return %arg0, %c0_i32, %c0_i32_0 : i32, i32, i32
  }
  func.func @transform_4(%arg0: i32) -> (i32, i32, i32) {
    %c0_i32 = arith.constant 0 : i32
    %c0_i32_0 = arith.constant 0 : i32
    %c0_i32_1 = arith.constant 0 : i32
    return %arg0, %c0_i32, %c0_i32_0 : i32, i32, i32
  }
}

</mosaic_0001>

<bundles_post_ra>
// kernel: tpu_custom_call.1
= control target key start
LH: loop header
LB: loop body
LE: loop exit
PB: predicated region body
PF: predicated region fallthrough
CT: control target
= control target key end

     0   :  { %s792_s15 = smov 0   ;;  %s1020_s0 = inlined_call_operand.vmem [shape: f32[2,16,3], index: 0, kind: input, shape index: {}]   ;;  %s1021_s1 = inlined_call_operand.vmem [shape: f32[2,3,432], index: 1, kind: input, shape index: {}]   ;;  %s1022_s2 = inlined_call_operand.vmem [shape: f32[2,16,3], index: 2, kind: input, shape index: {}]   ;;  %s1023_s3 = inlined_call_operand.vmem [shape: f32[2,3,3], index: 3, kind: input, shape index: {}]   ;;  %s1024_s4 = inlined_call_operand.vmem [shape: f32[2,16,3], index: 4, kind: output, shape index: {}]  }
   0x1 LB: > { %s705_s16 = sadd.s32 4294967295, %s762_s15   ;;  %p709_p0 = scmp.ge.s32.totalorder %s762_s15, 1  ;;  %s762_s15 = sphi %s792_s15, %s14_s15  }
   0x2   : > { %p191_p1 = scmp.lt.s32.totalorder %s762_s15, 3 }
   0x4   : > { %p192_p2 = pnand %p709_p0, %p191_p1 }
   0x5   : > { %p231_p3 = scmp.lt.s32.totalorder (!%p192_p2), %s705_s16, 1 }
   0x6   : > { %195 = sbr.rel (%p192_p2) target bundleno = 341 (0x155), region = 36 }
   0xb   : > { %v764_v0 = vmov 1   ;;  %v765_v1 = vmov 0   ;;  %s1028_s16 = smov (!%p231_p3, %s705_s16), 1  ;;  %v766_v4 = vmov 2   ;;  %v264_v5 = vlaneseq }
   0xc   : > { %737 = vset.pattern.permute.xlu1 %v764_v0  ;;  %736 = vset.pattern.permute.xlu0 %v765_v1  ;;  %s800_s17 = sshll.u32 %s1028_s16, 4  ;;  %s716_s21 = sshll.u32 %s1028_s16, 2  ;;  %vm536_vm9 = vcmask 392192  }
   0xd   : > { %s235_s20 = scalar_lea.vmem %s1020_s0, %s800_s17  ;;  %v265_v6 = vshrl.u32 %v264_v5, 7  ;;  %s249_s24 = scalar_lea.vmem %s1023_s3, %s716_s21 }
   0xe   : > { %v255_v2 = vld [vmem:[%s235_s20] sm:$0xff]  ;;  %v256_v3 = vld [vmem:[%s235_s20 + $0x8] sm:$0xff]  ;;  %s240_s27 = scalar_lea.vmem %s1021_s1, %s800_s17  ;;  %s245_s30 = scalar_lea.vmem %s1022_s2, %s800_s17 }
   0xf   : > { %355 = vperm.xlu1 %737, %v255_v2   ;;  %302 = vperm.xlu0 %736, %v255_v2   ;;  %v266_v7 = vsub.s32 0, %v265_v6  ;;  %v809_v8 = vld [vmem:[%s249_s24] sm:$0x7]  ;;  %v818_v10 = vsub.s32 1, %v265_v6  ;;  %v324_v11 = vsub.s32 5, %v265_v6  ;;  %v270_v14 = vsub.s32 4, %v265_v6  ;;  %s254_s7 = scalar_lea.vmem %s1024_s4, %s800_s17 }
  0x10   : > { %v257_v12 = vld [vmem:[%s240_s27] sm:$0x77]  ;;  %v258_v13 = vld [vmem:[%s240_s27 + $0x8] sm:$0x77]  ;;  %v822_v19 = vsub.s32 2, %v265_v6  ;;  %v376_v20 = vsub.s32 6, %v265_v6 }
  0x11   : > { %v812_v9 = vrot.slane %v809_v8, %v266_v7  ;;  %v321_v15 = vrot.slane %v257_v12, %v818_v10  ;;  %v325_v16 = vrot.slane %v257_v12, %v324_v11  ;;  %v329_v17 = vrot.slane %v258_v13, %v818_v10 }
  0x12   : > { %v333_v18 = vrot.slane %v258_v13, %v324_v11  ;;  %v267_v21 = vrot.slane %v257_v12, %v266_v7  ;;  %v271_v22 = vrot.slane %v257_v12, %v270_v14  ;;  %v275_v23 = vrot.slane %v258_v13, %v266_v7 }
  0x13   : > { %359 = vperm.xlu1 %737, %v256_v3   ;;  %307 = vperm.xlu0 %736, %v256_v3   ;;  %v279_v24 = vrot.slane %v258_v13, %v270_v14  ;;  %v341_v25 = vrot.slane %v321_v15, %v818_v10  ;;  %v345_v26 = vrot.slane %v325_v16, %v818_v10 }
  0x14   : > { %v349_v27 = vrot.slane %v329_v17, %v818_v10  ;;  %v353_v28 = vrot.slane %v333_v18, %v818_v10  ;;  %v373_v29 = vrot.slane %v257_v12, %v822_v19  ;;  %v377_v30 = vrot.slane %v257_v12, %v376_v20 }
  0x15   : > { %v381_v31 = vrot.slane %v258_v13, %v822_v19  ;;  %v287_v33 = vrot.slane %v267_v21, %v266_v7  ;;  %v291_v34 = vrot.slane %v271_v22, %v266_v7  ;;  %v295_v35 = vrot.slane %v275_v23, %v266_v7 }
  0x16   : > { %v385_v37 = vrot.slane %v258_v13, %v376_v20  ;;  %v299_v38 = vrot.slane %v279_v24, %v266_v7  ;;  %v393_v43 = vrot.slane %v373_v29, %v822_v19  ;;  %v397_v44 = vrot.slane %v377_v30, %v822_v19 }
  0x17   : > { %739 = vset.pattern.permute.xlu1 %v766_v4  ;;  %738 = vset.pattern.permute.xlu0 %v766_v4  ;;  %v401_v45 = vrot.slane %v381_v31, %v822_v19 }
  0x18   : > { %411 = vperm.xlu1 %739, %v256_v3   ;;  %407 = vperm.xlu0 %738, %v255_v2   ;;  %v405_v50 = vrot.slane %v385_v37, %v822_v19 }
  0x8a   : > { %v356_v32 = vpop.permute.xlu1 %355  ;;  %v303_v36 = vpop.permute.xlu0 %302 }
  0x8b   : > { %v830_v39 = vsub.f32 %v341_v25, %v356_v32  ;;  %v832_v40 = vsub.f32 %v345_v26, %v356_v32  ;;  %v834_v41 = vsub.f32 %v349_v27, %v356_v32  ;;  %v836_v42 = vsub.f32 %v353_v28, %v356_v32 }
  0x8c   : > { %v841_v46 = vsub.f32 %v287_v33, %v303_v36  ;;  %v843_v47 = vsub.f32 %v291_v34, %v303_v36  ;;  %v845_v48 = vsub.f32 %v295_v35, %v303_v36  ;;  %v848_v51 = vsub.f32 %v299_v38, %v303_v36 }
  0x8d   : > { %v430_v56 = vmul.f32 %v830_v39, %v830_v39  ;;  %v431_v57 = vmul.f32 %v832_v40, %v832_v40  ;;  %v432_v58 = vmul.f32 %v834_v41, %v834_v41  ;;  %v433_v60 = vmul.f32 %v836_v42, %v836_v42 }
  0x8e   : > { %v360_v49 = vpop.permute.xlu1 %359  ;;  %v308_v55 = vpop.permute.xlu0 %307  ;;  %v422_v4 = vmul.f32 %v841_v46, %v841_v46  ;;  %v423_v5 = vmul.f32 %v843_v47, %v843_v47  ;;  %v424_v6 = vmul.f32 %v845_v48, %v845_v48  ;;  %v425_v7 = vmul.f32 %v848_v51, %v848_v51 }
  0x8f   : > { %v850_v52 = vsub.f32 %v341_v25, %v360_v49  ;;  %v852_v53 = vsub.f32 %v345_v26, %v360_v49  ;;  %v854_v54 = vsub.f32 %v349_v27, %v360_v49  ;;  %v862_v59 = vsub.f32 %v353_v28, %v360_v49 }
  0x90   : > { %v872_v0 = vsub.f32 %v287_v33, %v308_v55  ;;  %v874_v1 = vsub.f32 %v291_v34, %v308_v55  ;;  %v876_v2 = vsub.f32 %v295_v35, %v308_v55  ;;  %v878_v3 = vsub.f32 %v299_v38, %v308_v55 }
  0x91   : > { %v434_v61 = vmul.f32 %v850_v52, %v850_v52  ;;  %v435_v62 = vmul.f32 %v852_v53, %v852_v53  ;;  %v436_v63 = vmul.f32 %v854_v54, %v854_v54  ;;  %v437_v12 = vmul.f32 %v862_v59, %v862_v59 }
  0x92   : > { %v426_v13 = vmul.f32 %v872_v0, %v872_v0  ;;  %v427_v14 = vmul.f32 %v874_v1, %v874_v1  ;;  %v428_v15 = vmul.f32 %v876_v2, %v876_v2  ;;  %v429_v22 = vmul.f32 %v878_v3, %v878_v3 }
  0x93   : > { %v412_v11 = vpop.permute.xlu1 %411  ;;  %v408_v21 = vpop.permute.xlu0 %407  ;;  %v438_v34 = vadd.f32 %v430_v56, %v422_v4  ;;  %v439_v35 = vadd.f32 %v431_v57, %v423_v5  ;;  %v441_v4 = vadd.f32 %v433_v60, %v425_v7 }
  0x94   : > { %v896_v16 = vsub.f32 %v393_v43, %v412_v11  ;;  %v898_v17 = vsub.f32 %v397_v44, %v412_v11  ;;  %v900_v18 = vsub.f32 %v401_v45, %v412_v11  ;;  %v902_v20 = vsub.f32 %v405_v50, %v412_v11 }
  0x95   : > { %v442_v23 = vadd.f32 %v434_v61, %v426_v13  ;;  %v443_v24 = vadd.f32 %v435_v62, %v427_v14  ;;  %v444_v25 = vadd.f32 %v436_v63, %v428_v15  ;;  %v914_v30 = vsub.f32 %v393_v43, %v408_v21 }
  0x96   : > { %v450_v26 = vmul.f32 %v896_v16, %v896_v16  ;;  %v451_v27 = vmul.f32 %v898_v17, %v898_v17  ;;  %v452_v28 = vmul.f32 %v900_v18, %v900_v18  ;;  %v453_v29 = vmul.f32 %v902_v20, %v902_v20 }
  0x97   : > { %v916_v31 = vsub.f32 %v397_v44, %v408_v21  ;;  %v918_v32 = vsub.f32 %v401_v45, %v408_v21  ;;  %v920_v33 = vsub.f32 %v405_v50, %v408_v21  ;;  %v445_v38 = vadd.f32 %v437_v12, %v429_v22 }
  0x98   : > { %v458_v36 = vadd.f32 %v450_v26, %v442_v23  ;;  %v459_v37 = vadd.f32 %v451_v27, %v443_v24  ;;  %v922_v49 = vadd.f32 %v452_v28, %v444_v25  ;;  %v446_v55 = vmul.f32 %v914_v30, %v914_v30 }
  0x99   : > { %v447_v43 = vmul.f32 %v916_v31, %v916_v31  ;;  %v448_v45 = vmul.f32 %v918_v32, %v918_v32  ;;  %v449_v50 = vmul.f32 %v920_v33, %v920_v33  ;;  %v932_v56 = vadd.f32 %v453_v29, %v445_v38 }
  0x9a   : > { %v490_v61 = vmax.f32 %v458_v36, 1e-12  ;;  %v491_v44 = vmax.f32 %v459_v37, 1e-12  ;;  %v454_v57 = vadd.f32 %v446_v55, %v438_v34  ;;  %v440_v63 = vadd.f32 %v432_v58, %v424_v6 }
  0x9b   : > { %v455_v62 = vadd.f32 %v447_v43, %v439_v35  ;;  %v936_v13 = vadd.f32 %v449_v50, %v441_v4  ;;  %v492_v14 = vmax.f32 %v922_v49, 1e-12  ;;  %v493_v15 = vmax.f32 %v932_v56, 1e-12 }
  0x9c   : > { %740 = vrsqrt.f32 %v490_v61  ;;  %v486_v5 = vmax.f32 %v454_v57, 1e-12  ;;  %v934_v12 = vadd.f32 %v448_v45, %v440_v63  ;;  %vm466_vm0 = vcmp.gt.f32.partialorder %v458_v36, 1e-12 }
  0x9d   : > { %742 = vrsqrt.f32 %v491_v44  ;;  %v487_v11 = vmax.f32 %v455_v62, 1e-12  ;;  %v489_v58 = vmax.f32 %v936_v13, 1e-12  ;;  %vm467_vm1 = vcmp.gt.f32.partialorder %v459_v37, 1e-12 }
  0x9e   : > { %744 = vrsqrt.f32 %v486_v5  ;;  %v488_v21 = vmax.f32 %v934_v12, 1e-12  ;;  %vm468_vm2 = vcmp.gt.f32.partialorder %v922_v49, 1e-12  ;;  %vm474_vm4 = vcmp.lt.f32.partialorder %v458_v36, 2.25 }
  0x9f   : > { %746 = vrsqrt.f32 %v487_v11  ;;  %vm475_vm5 = vcmp.lt.f32.partialorder %v459_v37, 2.25  ;;  %vm476_vm6 = vcmp.lt.f32.partialorder %v922_v49, 2.25  ;;  %vm462_vm7 = vcmp.gt.f32.partialorder %v454_v57, 1e-12  ;;  %vm482_vm12 = vmand %vm466_vm0, %vm474_vm4 }
  0xa0   : > { %748 = vrsqrt.f32 %v492_v14  ;;  %vm463_vm10 = vcmp.gt.f32.partialorder %v455_v62, 1e-12  ;;  %vm464_vm11 = vcmp.gt.f32.partialorder %v934_v12, 1e-12  ;;  %vm465_vm13 = vcmp.gt.f32.partialorder %v936_v13, 1e-12  ;;  %vm483_vm15 = vmand %vm467_vm1, %vm475_vm5 }
  0xa1   : > { %750 = vrsqrt.f32 %v493_v15  ;;  %vm470_vm14 = vcmp.lt.f32.partialorder %v454_v57, 2.25  ;;  %vm471_vm3 = vcmp.lt.f32.partialorder %v455_v62, 2.25  ;;  %vm472_vm8 = vcmp.lt.f32.partialorder %v934_v12, 2.25  ;;  %vm484_vm5 = vmand %vm468_vm2, %vm476_vm6 }
  0xa2   : > { %752 = vrsqrt.f32 %v488_v21  ;;  %vm473_vm0 = vcmp.lt.f32.partialorder %v936_v13, 2.25  ;;  %vm478_vm4 = vmand %vm462_vm7, %vm470_vm14  ;;  %vm1025_vm7 = vcmp.lt.f32.partialorder %v932_v56, 2.25 }
  0xa3   : > { %754 = vrsqrt.f32 %v489_v58  ;;  %vm479_vm1 = vmand %vm463_vm10, %vm471_vm3 }
  0xa4   : > { %vm480_vm2 = vmand %vm464_vm11, %vm472_vm8  ;;  %vm611_vm8 = vcmask 23552  }
  0xa5   : > { %vm481_vm6 = vmand %vm465_vm13, %vm473_vm0 }
  0xa9   : > { %v741_v60 = vpop.eup %740 }
  0xaa   : > { %v743_v6 = vpop.eup %742  ;;  %v506_v7 = vmul.f32 6.0, %v741_v60 }
  0xab   : > { %v507_v22 = vmul.f32 6.0, %v743_v6  ;;  %v745_v23 = vpop.eup %744 }
  0xac   : > { %v514_v24 = vsub.f32 4.0, %v506_v7  ;;  %v747_v25 = vpop.eup %746  ;;  %v502_v27 = vmul.f32 6.0, %v745_v23 }
  0xad   : > { %v515_v26 = vsub.f32 4.0, %v507_v22  ;;  %v749_v28 = vpop.eup %748  ;;  %v503_v34 = vmul.f32 6.0, %v747_v25 }
  0xae   : > { %v522_v29 = vsel %vm482_vm12, %v514_v24, 0.0  ;;  %v751_v35 = vpop.eup %750  ;;  %v508_v38 = vmul.f32 6.0, %v749_v28  ;;  %v510_v43 = vsub.f32 4.0, %v502_v27  ;;  %vm1026_vm12 = vcmp.gt.f32.partialorder %v932_v56, 1e-12 }
  0xaf   : > { %v523_v55 = vsel %vm483_vm15, %v515_v26, 0.0  ;;  %v530_v36 = vmul.f32 %v522_v29, %v872_v0  ;;  %v509_v61 = vmul.f32 6.0, %v751_v35  ;;  %v511_v37 = vsub.f32 4.0, %v503_v34  ;;  %v753_v45 = vpop.eup %752  ;;  %vm485_vm3 = vmand %vm1026_vm12, %vm1025_vm7 }
  0xb0   : > { %v531_v44 = vmul.f32 %v523_v55, %v874_v1  ;;  %v516_v50 = vsub.f32 4.0, %v508_v38  ;;  %v518_v63 = vsel %vm478_vm4, %v510_v43, 0.0  ;;  %v551_v4 = vmul.f32 %v522_v29, %v850_v52  ;;  %v755_v5 = vpop.eup %754 }
  0xb1   : > { %v552_v0 = vmul.f32 %v523_v55, %v852_v53  ;;  %v517_v1 = vsub.f32 4.0, %v509_v61  ;;  %v504_v11 = vmul.f32 6.0, %v753_v45  ;;  %v519_v14 = vsel %vm479_vm1, %v511_v37, 0.0 }
  0xb2   : > { %v541_v57 = vadd.f32 %v531_v44, %v530_v36  ;;  %v524_v62 = vsel %vm484_vm5, %v516_v50, 0.0  ;;  %v505_v15 = vmul.f32 6.0, %v755_v5  ;;  %v526_v52 = vmul.f32 %v518_v63, %v841_v46 }
  0xb3   : > { %v527_v53 = vmul.f32 %v519_v14, %v843_v47  ;;  %v525_v21 = vsel %vm485_vm3, %v517_v1, 0.0  ;;  %v532_v58 = vmul.f32 %v524_v62, %v876_v2  ;;  %v512_v49 = vsub.f32 4.0, %v504_v11 }
  0xb4   : > { %v547_v60 = vmul.f32 %v518_v63, %v830_v39  ;;  %v533_v6 = vmul.f32 %v525_v21, %v878_v3  ;;  %v513_v56 = vsub.f32 4.0, %v505_v15  ;;  %v548_v22 = vmul.f32 %v519_v14, %v832_v40 }
  0xb5   : > { %v534_v7 = vadd.f32 %v527_v53, %v526_v52  ;;  %v542_v46 = vadd.f32 %v541_v57, %v532_v58  ;;  %v520_v47 = vsel %vm480_vm2, %v512_v49, 0.0  ;;  %v553_v39 = vmul.f32 %v524_v62, %v854_v54  ;;  %v259_v53 = vld [vmem:[%s245_s30] sm:$0xff] }
  0xb6   : > { %v543_v2 = vsel %vm536_vm9, %v533_v6, 0.0  ;;  %v521_v3 = vsel %vm481_vm6, %v513_v56, 0.0  ;;  %v528_v23 = vmul.f32 %v520_v47, %v845_v48  ;;  %v549_v12 = vmul.f32 %v520_v47, %v834_v41 }
  0xb7   : > { %v544_v24 = vadd.f32 %v543_v2, %v542_v46  ;;  %v529_v25 = vmul.f32 %v521_v3, %v848_v51  ;;  %v550_v40 = vmul.f32 %v521_v3, %v836_v42  ;;  %v555_v26 = vadd.f32 %v548_v22, %v547_v60 }
  0xb8   : > { %v535_v27 = vadd.f32 %v534_v7, %v528_v23  ;;  %v554_v13 = vmul.f32 %v525_v21, %v862_v59  ;;  %v561_v28 = vadd.f32 %v552_v0, %v551_v4  ;;  %v567_v34 = vmul.f32 %v518_v63, %v914_v30 }
  0xb9   : > { %545 = vadd.xlane.f32.xlu0 %v544_v24  ;;  %v537_v54 = vsel %vm536_vm9, %v529_v25, 0.0  ;;  %v556_v35 = vadd.f32 %v555_v26, %v549_v12  ;;  %v568_v48 = vmul.f32 %v519_v14, %v916_v31  ;;  %v571_v41 = vmul.f32 %v522_v29, %v896_v16 }
  0xba   : > { %v538_v38 = vadd.f32 %v537_v54, %v535_v27  ;;  %v557_v51 = vsel %vm536_vm9, %v550_v40, 0.0  ;;  %v562_v36 = vadd.f32 %v561_v28, %v553_v39  ;;  %v570_v42 = vmul.f32 %v521_v3, %v920_v33 }
  0xbb   : > { %v558_v43 = vadd.f32 %v557_v51, %v556_v35  ;;  %v569_v59 = vmul.f32 %v520_v47, %v918_v32  ;;  %v575_v61 = vadd.f32 %v568_v48, %v567_v34  ;;  %v572_v30 = vmul.f32 %v523_v55, %v898_v17 }
  0xbc   : > { %539 = vadd.xlane.f32.xlu1 %v538_v38  ;;  %v563_v44 = vsel %vm536_vm9, %v554_v13, 0.0  ;;  %v573_v31 = vmul.f32 %v524_v62, %v900_v18  ;;  %v574_v16 = vmul.f32 %v525_v21, %v902_v20  ;;  %v577_v50 = vsel %vm536_vm9, %v570_v42, 0.0 }
  0xbd   : > { %559 = vadd.xlane.f32.xlu0 %v558_v43  ;;  %v576_v37 = vadd.f32 %v575_v61, %v569_v59  ;;  %v581_v29 = vadd.f32 %v572_v30, %v571_v41  ;;  %v564_v45 = vadd.f32 %v563_v44, %v562_v36  ;;  %v596_v4 = vrot.slane %v809_v8, %v818_v10 }
  0xbe   : > { %v583_v17 = vsel %vm536_vm9, %v574_v16, 0.0  ;;  %v604_v1 = vrot.slane %v809_v8, %v822_v19  ;;  %v260_v19 = vld [vmem:[%s245_s30 + $0x8] sm:$0xff] }
  0xbf   : > { %v578_v33 = vadd.f32 %v577_v50, %v576_v37  ;;  %v582_v63 = vadd.f32 %v581_v29, %v573_v31 }
  0xc0   : > { %565 = vadd.xlane.f32.xlu1 %v564_v45 }
  0xc1   : > { %579 = vadd.xlane.f32.xlu0 %v578_v33  ;;  %v584_v32 = vadd.f32 %v583_v17, %v582_v63 }
  0xc4   : > { %585 = vadd.xlane.f32.xlu1 %v584_v32 }
 0x142   : > { %v546_v55 = vpop.xlane.xlu0 %545 }
 0x143   : > { %v592_v14 = vmul.f32 %v812_v9, %v546_v55 }
 0x145   : > { %v540_v18 = vpop.xlane.xlu1 %539 }
 0x146   : > { %v560_v20 = vpop.xlane.xlu0 %559  ;;  %v591_v0 = vmul.f32 %v812_v9, %v540_v18 }
 0x147   : > { %v597_v5 = vmul.f32 %v596_v4, %v560_v20 }
 0x149   : > { %v566_v57 = vpop.xlane.xlu1 %565  ;;  %v599_v11 = vadd.f32 %v597_v5, %v591_v0 }
 0x14a   : > { %v598_v62 = vmul.f32 %v596_v4, %v566_v57  ;;  %v580_v15 = vpop.xlane.xlu0 %579 }
 0x14b   : > { %v605_v10 = vmul.f32 %v604_v1, %v580_v15 }
 0x14c   : > { %v600_v52 = vadd.f32 %v598_v62, %v592_v14 }
 0x14d   : > { %v586_v21 = vpop.xlane.xlu1 %585  ;;  %v607_v58 = vadd.f32 %v605_v10, %v599_v11 }
 0x14e   : > { %v606_v8 = vmul.f32 %v604_v1, %v586_v21 }
 0x14f   : > { %v609_v49 = vadd.f32 %v607_v58, %v259_v53 }
 0x150   : > { %v608_v60 = vadd.f32 %v606_v8, %v600_v52 }
 0x151   : > { %612 = vst.msk [vmem:[%s254_s7] sm:$0xff] %vm611_vm8, %v609_v49 }
 0x152   : > { %v610_v6 = vadd.f32 %v608_v60, %v260_v19 }
 0x154   : > { %613 = vst.msk [vmem:[%s254_s7 + $0x8] sm:$0xff] %vm611_vm8, %v610_v6 }
 0x155 PF: > { %s14_s15 = sadd.s32 1, %s762_s15  }
 0x156   : > { %p11_p4 = scmp.ge.s32.totalorder %s14_s15, 4  }
 0x158   :  { %13 = sbr.rel (!%p11_p4) target bundleno = 1 (0x1), region = 75 }

</bundles_post_ra>
